<compile_context>
chip_gen: v6e
topology: v6e:2x2x1
jax: 0.10.0
libtpu: 0.0.40
codegen_flags: <defaults>
</compile_context>

<pallas_src>
import jax
import jax.numpy as jnp
from jax import lax
from jax.experimental import pallas as pl
from jax.experimental.pallas import tpu as pltpu

K = 5     # conv kernel size
PAD = 2   # "same" padding for k=5, stride=1


def _conv_kernel(p_ref, w_ref, o_ref):
    """Single invocation: whole batch in one MXU matmul.

    p_ref: (KK+1, N*HW)  im2col patches (batch-major on lanes) + ones row (bias)
    w_ref: (C2, KK+1)    flattened conv2 weights with bias column appended
    o_ref: (N, C2, HW)   conv2 output, lane-dense (HW on the lane dim)
    """
    acc = jnp.dot(w_ref[...], p_ref[...],
                  preferred_element_type=jnp.float32)        # (C2, N*HW)
    n, _, hw = o_ref.shape
    for b in range(n):                                       # static, N is tiny
        o_ref[b] = acc[:, b * hw:(b + 1) * hw]               # lane-aligned slice


def reference_cnn_forward(x_nchw, w1, b1, w2, b2):
    """x_nchw: (N, 1, H, W). Weights in PyTorch layout (Cout, Cin, 5, 5).

    w1/b1 (layer1) are accepted but unused: forward() discards layer1's output.
    Returns filts in NCHW: (N, C2, H, W).
    """
    del w1, b1  # dead code in the reference forward()

    N, Cin, H, W = x_nchw.shape
    assert Cin == 1, "see TODO(synk) at top of file"
    C2 = w2.shape[0]
    KK = K * K
    HW = H * W
    KK1 = KK + 1  # +1 row of ones for the folded bias

    x = x_nchw[:, 0].astype(jnp.float32)                     # (N, H, W)
    xp = jnp.pad(x, ((0, 0), (PAD, PAD), (PAD, PAD)))        # (N, H+4, W+4)

    # im2col, taps on the leading axis (kh-major / kw-minor to match the
    # (C2, 1, K, K) -> (C2, K*K) weight flattening), batch-major on lanes.
    pats = jnp.stack([xp[:, kh:kh + H, kw:kw + W]
                      for kh in range(K) for kw in range(K)], axis=0)  # (25, N, H, W)
    pats = pats.reshape(KK, N * HW)                           # (25, N*HW)
    pats = jnp.concatenate(
        [pats, jnp.ones((1, N * HW), jnp.float32)], axis=0)   # (26, N*HW)

    w2f = jnp.concatenate(
        [w2.reshape(C2, KK).astype(jnp.float32),
         b2.reshape(C2, 1).astype(jnp.float32)], axis=1)      # (C2, 26)

    grid_spec = pltpu.PrefetchScalarGridSpec(
        num_scalar_prefetch=0,
        grid=(1,),                                            # single step: whole problem fits VMEM
        in_specs=[
            pl.BlockSpec((KK1, N * HW), lambda i: (0, 0)),    # patches (+ ones row)
            pl.BlockSpec((C2, KK1), lambda i: (0, 0)),        # weights (+ bias col)
        ],
        out_specs=pl.BlockSpec((N, C2, HW), lambda i: (0, 0, 0)),
    )

    filts = pl.pallas_call(
        _conv_kernel,
        out_shape=jax.ShapeDtypeStruct((N, C2, HW), jnp.float32),
        grid_spec=grid_spec,
    )(pats, w2f)

    # (N, C2, H*W) -> (N, C2, H, W): free reshape, already NCHW ordered.
    return filts.reshape(N, C2, H, W)


def _ref_conv_nchw(x_nchw, w, b):
    """Pure-JAX reference conv for correctness checking (NHWC internally)."""
    x = jnp.transpose(x_nchw, (0, 2, 3, 1))
    wt = jnp.transpose(w, (2, 3, 1, 0))  # HWIO
    out = lax.conv_general_dilated(
        x, wt, window_strides=(1, 1), padding="SAME",
        dimension_numbers=("NHWC", "HWIO", "NHWC"))
    out = out + b[None, None, None, :]
    return jnp.transpose(out, (0, 3, 1, 2))


if __name__ == "__main__":
    # Module hyper-parameters (small, consistent with the forward pass).
    input_channel = 3      # -> layer2 out_channels = filter_size^2 * input_channel
    hidden_channel = 16    # layer1 out_channels
    filter_size = 3
    Cin = 1                # see TODO(synk) at top of file
    N, H, W = 2, 16, 16

    C1 = hidden_channel
    C2 = filter_size * filter_size * input_channel  # 27

    key = jax.random.PRNGKey(0)
    kx, kw1, kb1, kw2, kb2 = jax.random.split(key, 5)

    # Deterministic parameter init (PyTorch-default-style uniform bound).
    bound = 1.0 / (Cin * K * K) ** 0.5
    w1 = jax.random.uniform(kw1, (C1, Cin, K, K), jnp.float32, -bound, bound)
    b1 = jax.random.uniform(kb1, (C1,), jnp.float32, -bound, bound)
    w2 = jax.random.uniform(kw2, (C2, Cin, K, K), jnp.float32, -bound, bound)
    b2 = jax.random.uniform(kb2, (C2,), jnp.float32, -bound, bound)

    x = jax.random.normal(kx, (N, Cin, H, W), jnp.float32)

    filts = reference_cnn_forward(x, w1, b1, w2, b2)
    filts = jax.block_until_ready(filts)

    # Verify against pure-JAX conv reference (f32 throughout -> tight tolerance OK).
    expected = _ref_conv_nchw(x, w2, b2)
    assert filts.shape == (N, C2, H, W), filts.shape
    assert jnp.allclose(filts, expected, atol=1e-4, rtol=1e-4), "mismatch vs reference conv"

    print("KERNEL_OK")
</pallas_src>

<mosaic_0001>
module attributes {stable_mosaic.version = 11 : i64} {
  func.func @_conv_kernel(%arg0: i32, %arg1: memref<26x512xf32, #tpu.memory_space<vmem>>, %arg2: memref<27x26xf32, #tpu.memory_space<vmem>>, %arg3: memref<2x27x256xf32, #tpu.memory_space<vmem>>) attributes {dimension_semantics = [#tpu.dimension_semantics<arbitrary>], iteration_bounds = array<i64: 1>, scalar_prefetch = 0 : i64, scratch_operands = 0 : i64, tpu.core_type = #tpu.core_type<tc>, window_params = [{pipeline_mode = #tpu.pipeline_mode<synchronous>, transform_indices = @transform_0, window_bounds = array<i64: 26, 512>}, {pipeline_mode = #tpu.pipeline_mode<synchronous>, transform_indices = @transform_1, window_bounds = array<i64: 27, 26>}, {pipeline_mode = #tpu.pipeline_mode<synchronous>, transform_indices = @transform_2, window_bounds = array<i64: 2, 27, 256>}]} {
    %c0 = arith.constant 0 : index
    %c0_0 = arith.constant 0 : index
    %0 = vector.load %arg2[%c0, %c0_0] : memref<27x26xf32, #tpu.memory_space<vmem>>, vector<27x26xf32>
    %c0_1 = arith.constant 0 : index
    %c0_2 = arith.constant 0 : index
    %1 = vector.load %arg1[%c0_1, %c0_2] : memref<26x512xf32, #tpu.memory_space<vmem>>, vector<26x512xf32>
    %cst = arith.constant dense<0.000000e+00> : vector<27x512xf32>
    %2 = tpu.matmul %0, %1, %cst {dimension_numbers = #tpu.dot_dimension_numbers<[1], [0], [0], [1], [0, 0, 1, 1], [], []>} : vector<27x26xf32>, vector<26x512xf32>, vector<27x512xf32> -> vector<27x512xf32>
    %3 = vector.extract_strided_slice %2 {offsets = [0, 0], sizes = [27, 256], strides = [1, 1]} : vector<27x512xf32> to vector<27x256xf32>
    %c0_3 = arith.constant 0 : index
    %c0_4 = arith.constant 0 : index
    %c0_5 = arith.constant 0 : index
    %4 = vector.load %arg3[%c0_3, %c0_4, %c0_5] : memref<2x27x256xf32, #tpu.memory_space<vmem>>, vector<1x27x256xf32>
    %5 = vector.shape_cast %4 : vector<1x27x256xf32> to vector<27x256xf32>
    %6 = vector.shape_cast %3 : vector<27x256xf32> to vector<1x27x256xf32>
    tpu.vector_store %arg3[%c0_3, %c0_4, %c0_5], %6 {strides = array<i32>} : memref<2x27x256xf32, #tpu.memory_space<vmem>>, vector<1x27x256xf32>,
    %7 = vector.extract_strided_slice %2 {offsets = [0, 256], sizes = [27, 256], strides = [1, 1]} : vector<27x512xf32> to vector<27x256xf32>
    %c1 = arith.constant 1 : index
    %c0_6 = arith.constant 0 : index
    %c0_7 = arith.constant 0 : index
    %8 = vector.load %arg3[%c1, %c0_6, %c0_7] : memref<2x27x256xf32, #tpu.memory_space<vmem>>, vector<1x27x256xf32>
    %9 = vector.shape_cast %8 : vector<1x27x256xf32> to vector<27x256xf32>
    %10 = vector.shape_cast %7 : vector<27x256xf32> to vector<1x27x256xf32>
    tpu.vector_store %arg3[%c1, %c0_6, %c0_7], %10 {strides = array<i32>} : memref<2x27x256xf32, #tpu.memory_space<vmem>>, vector<1x27x256xf32>,
    return
  }
  func.func @transform_0(%arg0: i32) -> (i32, i32) {
    %c0_i32 = arith.constant 0 : i32
    %c0_i32_0 = arith.constant 0 : i32
    %c0_i32_1 = arith.constant 0 : i32
    return %c0_i32, %c0_i32_0 : i32, i32
  }
  func.func @transform_1(%arg0: i32) -> (i32, i32) {
    %c0_i32 = arith.constant 0 : i32
    %c0_i32_0 = arith.constant 0 : i32
    %c0_i32_1 = arith.constant 0 : i32
    return %c0_i32, %c0_i32_0 : i32, i32
  }
  func.func @transform_2(%arg0: i32) -> (i32, i32, i32) {
    %c0_i32 = arith.constant 0 : i32
    %c0_i32_0 = arith.constant 0 : i32
    %c0_i32_1 = arith.constant 0 : i32
    %c0_i32_2 = arith.constant 0 : i32
    return %c0_i32, %c0_i32_0, %c0_i32_1 : i32, i32, i32
  }
}

</mosaic_0001>

<bundles_post_ra>
// kernel: tpu_custom_call.1
= control target key start
LH: loop header
LB: loop body
LE: loop exit
PB: predicated region body
PF: predicated region fallthrough
CT: control target
= control target key end

     0   :  { %7 = vsyncpa [#allocation3], 0  ;;  %s441_s0 = inlined_call_operand.hbm [shape: f32[26,512], index: 0, kind: input, shape index: {}]   ;;  %s442_s1 = inlined_call_operand.hbm [shape: f32[27,26], index: 1, kind: input, shape index: {}]   ;;  %s443_s2 = inlined_call_operand.vmem [shape: f32[2,27,256], index: 2, kind: output, shape index: {}]  }
   0x1   :  { %8 = vsyncpa [#allocation5], 0  ;;  %s357_s9 = smov [#allocation2]  }
   0x2   :  { %s14_s10 = sshll.u32 %s357_s9, 4  ;;  %s15_s10 = int_to_ptr.vmem [resolvable:$true] %s14_s10 }
   0x3   :  { %s321_s11 = scalar_lea.vmem %s15_s10, 2048  ;;  %p326_p1 = scmp.lt.s32.totalorder %s15_s10, %s15_s10 }
   0x4   :  { %p322_p0 = scmp.ne.s32.totalorder %s15_s10, %s321_s11  ;;  %p327_p2 = scmp.lt.s32.totalorder %s321_s11, %s321_s11 }
   0x6   :  { %p328_p3 = por %p327_p2, %p326_p1 }
   0x8   :  { %p329_p4 = pnand %p328_p3, %p322_p0 }
   0xa   :  { %332 = shalt.err (!%p329_p4)
}
   0xb   :  { %s358_s12 = smov 512   ;;  %s359_s13 = smov 32  }
   0xc   :  { %20 = dma.hbm_to_vmem [thread:$0]  %s441_s0, 2048, %s15_s10, [#allocation3], %s358_s12, %s358_s12, %s359_s13  }
   0xd   :  { %s360_s16 = smov [#allocation4]  }
   0xe   :  { %s26_s17 = sshll.u32 %s360_s16, 4  ;;  %s27_s17 = int_to_ptr.vmem [resolvable:$true] %s26_s17 }
   0xf   :  { %s341_s18 = scalar_lea.vmem %s27_s17, 512  ;;  %p346_p6 = scmp.lt.s32.totalorder %s27_s17, %s27_s17 }
  0x10   :  { %p342_p5 = scmp.ne.s32.totalorder %s27_s17, %s341_s18  ;;  %p347_p7 = scmp.lt.s32.totalorder %s341_s18, %s341_s18 }
  0x12   :  { %p348_p8 = por %p347_p7, %p346_p6 }
  0x14   :  { %p349_p9 = pnand %p348_p8, %p342_p5 }
  0x16   :  { %352 = shalt.err (!%p349_p9)
}
  0x17   :  { %s361_s19 = smov 128   ;;  %s362_s20 = smov 8  }
  0x18   :  { %32 = dma.hbm_to_vmem [thread:$0]  %s442_s1, 512, %s27_s17, [#allocation5], %s361_s19, %s361_s19, %s362_s20  }
  0x19   :  { %353 = dma.done.wait [#allocation3], 2048  }
  0x1a   :  { %354 = vsyncadd [#allocation3], 4294965248 }
  0x1b   :  { %355 = dma.done.wait [#allocation5], 512  }
  0x1c   :  { %356 = vsyncadd [#allocation5], 4294966784  ;;  %v363_v0 = vmov 0.0   ;;  %vm72_vm0 = vcmask 1041408   ;;  %v56_v1 = vld [vmem:[#allocation2 + $0x68] sm:$0x3] }
  0x1d   :  { %149 = vmatprep.mubr.f32.mxu0 %v363_v0  ;;  %238 = vmatprep.mubr.f32.mxu1 %v363_v0  ;;  %v58_v2 = vld [vmem:[#allocation2 + $0x78] sm:$0x3]  ;;  %v55_v3 = vld [vmem:[#allocation2 + $0x60] sm:$0x3]  ;;  %v57_v4 = vld [vmem:[#allocation2 + $0x70] sm:$0x3] }
  0x1e   :  { %286 = vmatprep.subr.msk.mxu0 %vm72_vm0, %v56_v1  ;;  %292 = vmatprep.subr.msk.mxu1 %vm72_vm0, %v58_v2  ;;  %v52_v5 = vld [vmem:[#allocation2 + $0x48] sm:$0xff]  ;;  %v54_v6 = vld [vmem:[#allocation2 + $0x58] sm:$0xff]  ;;  %v51_v7 = vld [vmem:[#allocation2 + $0x40] sm:$0xff]  ;;  %vm59_vm1 = vcmask 211968  }
  0x1f   :  { %287 = vmatpush1.msk.msra.mxu0 %vm72_vm0, %v55_v3  ;;  %293 = vmatpush1.msk.msra.mxu1 %vm72_vm0, %v57_v4  ;;  %v53_v8 = vld [vmem:[#allocation2 + $0x50] sm:$0xff]  ;;  %v48_v9 = vld [vmem:[#allocation2 + $0x28] sm:$0xff]  ;;  %v50_v10 = vld [vmem:[#allocation2 + $0x38] sm:$0xff] }
  0x20   :  { %111 = vmatprep.subr.mxu0 %v52_v5  ;;  %200 = vmatprep.subr.mxu1 %v54_v6  ;;  %v47_v11 = vld [vmem:[#allocation2 + $0x20] sm:$0xff]  ;;  %v49_v12 = vld [vmem:[#allocation2 + $0x30] sm:$0xff]  ;;  %v44_v13 = vld [vmem:[#allocation2 + $0x8] sm:$0xff] }
  0x21   :  { %112 = vmatpush1.msra.mxu0 %v51_v7  ;;  %201 = vmatpush1.msra.mxu1 %v53_v8  ;;  %v46_v14 = vld [vmem:[#allocation2 + $0x18] sm:$0xff]  ;;  %v43_v15 = vld [vmem:[#allocation2] sm:$0xff]  ;;  %v45_v16 = vld [vmem:[#allocation2 + $0x10] sm:$0xff] }
  0x22   :  { %113 = vmatprep.subr.mxu0 %v48_v9  ;;  %202 = vmatprep.subr.mxu1 %v50_v10  ;;  %v39_v17 = vld [vmem:[#allocation4] sm:$0xff]  ;;  %v40_v18 = vld [vmem:[#allocation4 + $0x8] sm:$0xff]  ;;  %v41_v19 = vld [vmem:[#allocation4 + $0x10] sm:$0xff] }
  0x23   :  { %114 = vmatpush1.msra.mxu0 %v47_v11  ;;  %203 = vmatpush1.msra.mxu1 %v49_v12  ;;  %v42_v20 = vld [vmem:[#allocation4 + $0x18] sm:$0x7] }
  0x24   :  { %115 = vmatprep.subr.mxu0 %v44_v13  ;;  %204 = vmatprep.subr.mxu1 %v46_v14 }
  0x25   :  { %116 = vmatpush1.msra.mxu0 %v43_v15  ;;  %205 = vmatpush1.msra.mxu1 %v45_v16 }
  0x26   :  { %288 = vmatmul.mubr.msk.f32.vlgmr.msra.gmra.mxu0 %vm59_vm1, %v39_v17  ;;  %294 = vmatmul.mubr.msk.f32.vlgmr.msra.gmra.mxu1 %vm59_vm1, %v39_v17 }
  0x27   :  { %155 = vmatprep.mubr.f32.mxu0 %v363_v0  ;;  %244 = vmatprep.mubr.f32.mxu1 %v363_v0 }
  0x2a   :  { %289 = vmatmul.mubr.msk.f32.gmra.mxu0 %vm59_vm1, %v40_v18  ;;  %295 = vmatmul.mubr.msk.f32.gmra.mxu1 %vm59_vm1, %v40_v18 }
  0x2b   :  { %161 = vmatprep.mubr.f32.mxu0 %v363_v0  ;;  %250 = vmatprep.mubr.f32.mxu1 %v363_v0 }
  0x2e   :  { %290 = vmatmul.mubr.msk.f32.gmra.mxu0 %vm59_vm1, %v41_v19  ;;  %296 = vmatmul.mubr.msk.f32.gmra.mxu1 %vm59_vm1, %v41_v19 }
  0x2f   :  { %167 = vmatprep.mubr.f32.mxu0 %v363_v0  ;;  %256 = vmatprep.mubr.f32.mxu1 %v363_v0 }
  0x32   :  { %291 = vmatmul.mubr.msk.f32.gmra.mxu0 %vm59_vm1, %v42_v20  ;;  %297 = vmatmul.mubr.msk.f32.gmra.mxu1 %vm59_vm1, %v42_v20 }
  0xe6   :  { %v151_v21 = vpop.f32.mrf.mxu0  ;;  %v240_v22 = vpop.f32.mrf.mxu1 }
  0xe7   :  { %263 = vst [vmem:[%s443_s2] sm:$0xff] %v151_v21  ;;  %298 = vst [vmem:[%s443_s2 + $0x40] sm:$0xff] %v240_v22 }
  0xe8   :  { %v153_v23 = vpop.f32.mrf.mxu0  ;;  %v242_v24 = vpop.f32.mrf.mxu1 }
  0xe9   :  { %264 = vst [vmem:[%s443_s2 + $0x8] sm:$0xff] %v153_v23  ;;  %299 = vst [vmem:[%s443_s2 + $0x48] sm:$0xff] %v242_v24 }
  0xea   :  { %v157_v25 = vpop.f32.mrf.mxu0  ;;  %v246_v26 = vpop.f32.mrf.mxu1 }
  0xeb   :  { %265 = vst [vmem:[%s443_s2 + $0x10] sm:$0xff] %v157_v25  ;;  %300 = vst [vmem:[%s443_s2 + $0x50] sm:$0xff] %v246_v26 }
  0xec   :  { %v159_v27 = vpop.f32.mrf.mxu0  ;;  %v248_v28 = vpop.f32.mrf.mxu1 }
  0xed   :  { %266 = vst [vmem:[%s443_s2 + $0x18] sm:$0xff] %v159_v27  ;;  %301 = vst [vmem:[%s443_s2 + $0x58] sm:$0xff] %v248_v28 }
  0xee   :  { %v163_v29 = vpop.f32.mrf.mxu0  ;;  %v252_v30 = vpop.f32.mrf.mxu1 }
  0xef   :  { %267 = vst [vmem:[%s443_s2 + $0x20] sm:$0xff] %v163_v29  ;;  %302 = vst [vmem:[%s443_s2 + $0x60] sm:$0xff] %v252_v30 }
  0xf0   :  { %v165_v31 = vpop.f32.mrf.mxu0  ;;  %v254_v32 = vpop.f32.mrf.mxu1 }
  0xf1   :  { %268 = vst [vmem:[%s443_s2 + $0x28] sm:$0xff] %v165_v31  ;;  %303 = vst [vmem:[%s443_s2 + $0x68] sm:$0xff] %v254_v32 }
  0xf2   :  { %v169_v33 = vpop.f32.mrf.mxu0  ;;  %v258_v34 = vpop.f32.mrf.mxu1 }
  0xf3   :  { %269 = vst [vmem:[%s443_s2 + $0x30] sm:$0x7] %v169_v33  ;;  %304 = vst [vmem:[%s443_s2 + $0x70] sm:$0x7] %v258_v34 }
  0xf4   :  { %v171_v35 = vpop.f32.mrf.mxu0  ;;  %v260_v36 = vpop.f32.mrf.mxu1 }
  0xf5   :  { %270 = vst [vmem:[%s443_s2 + $0x38] sm:$0x7] %v171_v35  ;;  %305 = vst [vmem:[%s443_s2 + $0x78] sm:$0x7] %v260_v36 }
  0xf6   :  { %284 = vsyncpa [#allocation3], 1 }
  0xf7   :  { %285 = vsyncpa [#allocation5], 1 }

</bundles_post_ra>
